<compile_context>
chip_gen: v7x
topology: tpu7x:2x2x1
jax: 0.10.0
libtpu: 0.0.40
codegen_flags: <defaults>
</compile_context>

<pallas_src>
import functools

import jax
import jax.numpy as jnp
from jax.experimental import pallas as pl
from jax.experimental.pallas import tpu as pltpu

_TARGET_BLOCK_BYTES = 4 * 1024 * 1024    # ~4 MiB per block, any dtype
_LANE_WIDTHS = (1024, 2048, 4096, 512, 256, 128)
_VMEM_LIMIT_BYTES = 32 * 1024 * 1024     # raises v5e's 16 MiB default; == v6e/v7x default


def _qcfs_kernel(thresh_ref, x_ref, o_ref, *, L):
    # thresh_ref: (1, 1) f32 scalar in SMEM; x_ref/o_ref: (block_rows, W) VMEM tiles.
    t = thresh_ref[0, 0]
    x = x_ref[...].astype(jnp.float32)
    y = x / t                                            # true divide: matches torch `x / thresh`
    y = jnp.clip(y, 0.0, 1.0)
    y = jnp.floor(y * jnp.float32(L) + jnp.float32(0.5))
    y = y / jnp.float32(L)
    y = y * t
    o_ref[...] = y.astype(o_ref.dtype)


def _plan_slab(n, itemsize):
    """Pick (lane_width W, block_rows) for n flat elements.  Needs n % 128 == 0."""
    pack = 8 * max(1, 4 // itemsize)         # sublane pack: 8 f32, 16 bf16, 32 int8
    for w in _LANE_WIDTHS:
        if n % w:
            continue
        rows = n // w
        # ~_TARGET_BLOCK_BYTES per block, rows a multiple of the sublane pack.
        max_br = max(pack, (_TARGET_BLOCK_BYTES // (w * itemsize)) // pack * pack)
        # Keep >= 2 grid steps for medium inputs so both v7x TensorCores get work.
        if rows > 2 * pack:
            half = ((rows + 1) // 2 + pack - 1) // pack * pack
            max_br = min(max_br, max(pack, half))
        if rows <= max_br:
            return w, rows                    # one full-extent block
        # Prefer an exact divisor near the target (avoids a masked boundary block),
        # scanning every pack-multiple (not just power-of-two halvings).
        min_br = max(pack, max_br // 2)
        br = max_br
        while br >= min_br:
            if rows % br == 0:
                return w, br
            br -= pack
        return w, max_br                      # last grid step is a partial (masked) block
    return None                               # n not a multiple of 128 (ragged)


def _qcfs_slab_call(flat, thresh_2d, L):
    """Run the kernel on a 1-D array whose length is a multiple of 128."""
    n = flat.shape[0]
    itemsize = jnp.dtype(flat.dtype).itemsize
    w, br = _plan_slab(n, itemsize)
    rows = n // w
    slab = flat.reshape(rows, w)

    kernel = functools.partial(_qcfs_kernel, L=L)
    out_slab = pl.pallas_call(
        kernel,
        out_shape=jax.ShapeDtypeStruct((rows, w), slab.dtype),
        grid_spec=pltpu.PrefetchScalarGridSpec(
            num_scalar_prefetch=0,
            grid=(pl.cdiv(rows, br),),
            in_specs=[
                pl.BlockSpec(memory_space=pltpu.SMEM),        # thresh scalar
                pl.BlockSpec((br, w), lambda i: (i, 0)),
            ],
            out_specs=pl.BlockSpec((br, w), lambda i: (i, 0)),
        ),
        compiler_params=pltpu.CompilerParams(
            dimension_semantics=("parallel",),
            vmem_limit_bytes=_VMEM_LIMIT_BYTES,
        ),
        cost_estimate=pl.CostEstimate(
            flops=8 * n,
            transcendentals=0,
            bytes_accessed=2 * n * itemsize,
        ),
    )(thresh_2d, slab)
    return out_slab.reshape(-1)


def _qcfs_jnp(x, t, L):
    """Pure-jnp QCFS math (only used for a <128-element ragged tail)."""
    y = x.astype(jnp.float32) / t
    y = jnp.clip(y, 0.0, 1.0)
    y = jnp.floor(y * L + 0.5) / L
    return (y * t).astype(x.dtype)


def qcfs_if_forward(x, thresh, L=8):
    """Apply QCFS_IF forward to `x` (any shape). `thresh` has shape () or (1,)."""
    orig_shape = x.shape
    n = x.size
    flat = jnp.ravel(x)                       # keep input dtype: no upcast HBM pass
    thresh_2d = jnp.reshape(thresh.astype(jnp.float32), (1, 1))

    m = (n // 128) * 128                      # bulk handled by the Pallas kernel
    if m == 0:
        out = _qcfs_jnp(flat, thresh_2d[0, 0], L)
    elif m == n:
        out = _qcfs_slab_call(flat, thresh_2d, L)
    else:
        # Rare ragged size: <128-element tail via jnp; avoids whole-tensor pad+slice.
        head = _qcfs_slab_call(flat[:m], thresh_2d, L)
        tail = _qcfs_jnp(flat[m:], thresh_2d[0, 0], L)
        out = jnp.concatenate([head, tail])
    return out.reshape(orig_shape)


def qcfs_if_reference(x, thresh, L=8):
    """Pure-JAX reference mirroring the PyTorch forward exactly."""
    t = thresh.astype(jnp.float32)
    y = x.astype(jnp.float32) / t
    y = jnp.clip(y, 0.0, 1.0)
    y = jnp.floor(y * L + 0.5) / L
    return (y * t).astype(x.dtype)


# TODO(synk): QCFS_GradFloor's straight-through backward (grad passes unchanged) is
# training-only and not implemented here; this file covers the forward pass.

if __name__ == "__main__":
    # Deterministic parameter init (matches nn.Parameter(torch.tensor([8.0]))).
    L = 8
    thresh = jnp.array([8.0], dtype=jnp.float32)
    key = jax.random.PRNGKey(0)

    # Small NCHW activation (main check).
    x = jax.random.normal(key, (2, 4, 16, 16), dtype=jnp.float32) * 6.0
    out = jax.block_until_ready(qcfs_if_forward(x, thresh, L=L))
    ref = qcfs_if_reference(x, thresh[0], L=L)
    assert out.shape == x.shape and out.dtype == x.dtype
    assert jnp.allclose(out, ref, atol=1e-6, rtol=1e-6), "f32 mismatch vs reference"

    # Mid-size check: exact-divisor, multi-block (grid > 1) path.
    x2 = jax.random.normal(jax.random.PRNGKey(1), (8, 32, 56, 56), jnp.float32) * 6.0
    out2 = jax.block_until_ready(qcfs_if_forward(x2, thresh, L=L))
    ref2 = qcfs_if_reference(x2, thresh[0], L=L)
    assert jnp.allclose(out2, ref2, atol=1e-6, rtol=1e-6), "multi-block mismatch"

    # Awkward row count (rows=1000 at W=1024): masked boundary block, no pad pass.
    x3 = jax.random.normal(jax.random.PRNGKey(2), (1000, 1024), jnp.float32) * 6.0
    out3 = jax.block_until_ready(qcfs_if_forward(x3, thresh, L=L))
    ref3 = qcfs_if_reference(x3, thresh[0], L=L)
    assert jnp.allclose(out3, ref3, atol=1e-6, rtol=1e-6), "masked-boundary mismatch"

    # bf16 check: dtype-aware block sizing (16-row sublane pack).
    x4 = (jax.random.normal(jax.random.PRNGKey(3), (4, 8, 32, 32), jnp.float32) * 6.0
          ).astype(jnp.bfloat16)
    out4 = jax.block_until_ready(qcfs_if_forward(x4, thresh, L=L))
    ref4 = qcfs_if_reference(x4, thresh[0], L=L)
    assert out4.dtype == jnp.bfloat16
    assert jnp.allclose(out4.astype(jnp.float32), ref4.astype(jnp.float32),
                        atol=1e-2, rtol=1e-2), "bf16 mismatch"

    # Ragged check: n not a multiple of 128 (kernel bulk + jnp tail, no pad pass).
    x5 = jax.random.normal(jax.random.PRNGKey(4), (1000,), jnp.float32) * 6.0
    out5 = jax.block_until_ready(qcfs_if_forward(x5, thresh, L=L))
    ref5 = qcfs_if_reference(x5, thresh[0], L=L)
    assert jnp.allclose(out5, ref5, atol=1e-6, rtol=1e-6), "ragged mismatch"

    print("KERNEL_OK")
</pallas_src>

<mosaic_0001>
module attributes {stable_mosaic.version = 11 : i64} {
  func.func @_qcfs_kernel(%arg0: i32, %arg1: memref<1x1xf32, #tpu.memory_space<smem>>, %arg2: memref<2x1024xf32, #tpu.memory_space<vmem>>, %arg3: memref<2x1024xf32, #tpu.memory_space<vmem>>) attributes {dimension_semantics = [#tpu.dimension_semantics<parallel>], iteration_bounds = array<i64: 1>, scalar_prefetch = 0 : i64, scratch_operands = 0 : i64, tpu.core_type = #tpu.core_type<tc>, window_params = [{transform_indices = @transform_0, window_bounds = array<i64: 1, 1>}, {transform_indices = @transform_1, window_bounds = array<i64: 2, 1024>}, {transform_indices = @transform_2, window_bounds = array<i64: 2, 1024>}]} {
    %c0 = arith.constant 0 : index
    %c0_0 = arith.constant 0 : index
    %0 = memref.load %arg1[%c0, %c0_0] : memref<1x1xf32, #tpu.memory_space<smem>>
    %c0_1 = arith.constant 0 : index
    %c0_2 = arith.constant 0 : index
    %1 = vector.load %arg2[%c0_1, %c0_2] : memref<2x1024xf32, #tpu.memory_space<vmem>>, vector<2x1024xf32>
    %2 = vector.broadcast %0 : f32 to vector<2x1024xf32>
    %3 = arith.divf %1, %2 : vector<2x1024xf32>
    %cst = arith.constant 0.000000e+00 : f32
    %cst_3 = arith.constant 1.000000e+00 : f32
    %4 = vector.broadcast %cst : f32 to vector<2x1024xf32>
    %5 = arith.maximumf %4, %3 : vector<2x1024xf32>
    %6 = vector.broadcast %cst_3 : f32 to vector<2x1024xf32>
    %7 = arith.minimumf %6, %5 : vector<2x1024xf32>
    %cst_4 = arith.constant 8.000000e+00 : f32
    %8 = vector.broadcast %cst_4 : f32 to vector<2x1024xf32>
    %9 = arith.mulf %7, %8 : vector<2x1024xf32>
    %cst_5 = arith.constant 5.000000e-01 : f32
    %10 = vector.broadcast %cst_5 : f32 to vector<2x1024xf32>
    %11 = arith.addf %9, %10 : vector<2x1024xf32>
    %12 = math.floor %11 : vector<2x1024xf32>
    %cst_6 = arith.constant 8.000000e+00 : f32
    %13 = vector.broadcast %cst_6 : f32 to vector<2x1024xf32>
    %14 = arith.divf %12, %13 : vector<2x1024xf32>
    %15 = vector.broadcast %0 : f32 to vector<2x1024xf32>
    %16 = arith.mulf %14, %15 : vector<2x1024xf32>
    %c0_7 = arith.constant 0 : index
    %c0_8 = arith.constant 0 : index
    %17 = vector.load %arg3[%c0_7, %c0_8] : memref<2x1024xf32, #tpu.memory_space<vmem>>, vector<2x1024xf32>
    tpu.vector_store %arg3[%c0_7, %c0_8], %16 {strides = array<i32>} : memref<2x1024xf32, #tpu.memory_space<vmem>>, vector<2x1024xf32>,
    return
  }
  func.func @transform_0(%arg0: i32) -> (i32, i32) {
    %c0_i32 = arith.constant 0 : i32
    %c0_i32_0 = arith.constant 0 : i32
    %c0_i32_1 = arith.constant 0 : i32
    return %c0_i32, %c0_i32_0 : i32, i32
  }
  func.func @transform_1(%arg0: i32) -> (i32, i32) {
    %c0_i32 = arith.constant 0 : i32
    %c0_i32_0 = arith.constant 0 : i32
    return %arg0, %c0_i32 : i32, i32
  }
  func.func @transform_2(%arg0: i32) -> (i32, i32) {
    %c0_i32 = arith.constant 0 : i32
    %c0_i32_0 = arith.constant 0 : i32
    return %arg0, %c0_i32 : i32, i32
  }
}

</mosaic_0001>

<bundles_post_ra>
// kernel: tpu_custom_call.1
= control target key start
LH: loop header
LB: loop body
LE: loop exit
PB: predicated region body
PF: predicated region fallthrough
CT: control target
= control target key end

     0   :  { %8 = vsyncpa [#allocation4], 0  ;;  %s160_s0 = inlined_call_operand.<no memory space> [shape: f32[1,1], index: 0, kind: input, shape index: {}]   ;;  %s161_s1 = inlined_call_operand.hbm [shape: f32[2,1024], index: 1, kind: input, shape index: {}]   ;;  %s162_s2 = inlined_call_operand.hbm [shape: f32[2,1024], index: 2, kind: output, shape index: {}]  }
   0x1   :  { %9 = vsyncpa [#allocation5], 0  ;;  %s116_s9 = smov [#allocation3]   ;;  %s68_s13 = scalar_lea.hbm %s161_s1, 256 }
   0x2   :  { %s18_s10 = sshll.u32 %s116_s9, 4  ;;  %p69_p0 = scmp.ne.s32.totalorder %s161_s1, %s68_s13  ;;  %s19_s10 = int_to_ptr.vmem [resolvable:$true] %s18_s10 }
   0x3   :  { %p72_p1 = scmp.lt.u32.totalorder %s68_s13, %s161_s1 }
   0x5   :  { %p74_p2 = pnand %p72_p1, %p69_p0 }
   0x7   :  { %77 = shalt.err (!%p74_p2)
}
   0x8   :  { %s78_s18 = scalar_lea.vmem %s19_s10, 256  ;;  %p83_p4 = scmp.lt.s32.totalorder %s19_s10, %s19_s10 }
   0x9   :  { %p79_p3 = scmp.ne.s32.totalorder %s19_s10, %s78_s18  ;;  %p84_p5 = scmp.lt.s32.totalorder %s78_s18, %s78_s18 }
   0xb   :  { %p85_p6 = por %p84_p5, %p83_p4 }
   0xd   :  { %p86_p7 = pnand %p85_p6, %p79_p3 }
   0xf   :  { %89 = shalt.err (!%p86_p7)
}
  0x10   :  { %21 = dma.hbm_to_vmem [thread:$0]  %s161_s1, 256, %s19_s10, [#allocation4]  }
  0x11   :  { %112 = dma.done.wait [#allocation4], 256  }
  0x12   :  { %113 = vsyncadd [#allocation4], 4294967040  ;;  %v28_v0 = vstv %s160_s0  ;;  %v26_v1 = vld [vmem:[#allocation3] sm:$0xff]  ;;  %v27_v2 = vld [vmem:[#allocation3 + $0x8] sm:$0xff]  ;;  %s117_s1 = smov [#allocation6]  }
  0x13   :  { %66 = vrcp.f32 %v28_v0  ;;  %s55_s23 = sshll.u32 %s117_s1, 4  ;;  %s56_s23 = int_to_ptr.vmem [resolvable:$true] %s55_s23 }
  0x14   :  { %s90_s0 = scalar_lea.vmem %s56_s23, 256  ;;  %p95_p9 = scmp.lt.s32.totalorder %s56_s23, %s56_s23 }
  0x15   :  { %p91_p8 = scmp.ne.s32.totalorder %s56_s23, %s90_s0  ;;  %p96_p10 = scmp.lt.s32.totalorder %s90_s0, %s90_s0 }
  0x17   :  { %p97_p11 = por %p96_p10, %p95_p9 }
  0x19   :  { %p98_p12 = pnand %p97_p11, %p91_p8 }
  0x1d   :  { %v67_v3 = vpop.eup %66 }
  0x1e   :  { %v30_v4 = vmul.f32 %v67_v3, %v26_v1  ;;  %v31_v5 = vmul.f32 %v67_v3, %v27_v2 }
  0x20   :  { %v32_v6 = vmax.f32 %v30_v4, 0.0  ;;  %v33_v7 = vmax.f32 %v31_v5, 0.0 }
  0x22   :  { %v34_v8 = vmin.f32 %v32_v6, 1.0  ;;  %v35_v9 = vmin.f32 %v33_v7, 1.0 }
  0x24   :  { %v36_v10 = vmul.f32 8.0, %v34_v8  ;;  %v37_v11 = vmul.f32 8.0, %v35_v9 }
  0x26   :  { %v38_v12 = vadd.f32 0.5, %v36_v10  ;;  %v39_v13 = vadd.f32 0.5, %v37_v11 }
  0x28   :  { %v40_v14 = vfloor.f32 %v38_v12  ;;  %v41_v15 = vfloor.f32 %v39_v13 }
  0x2a   :  { %v43_v16 = vmul.f32 0.125, %v40_v14  ;;  %v44_v17 = vmul.f32 0.125, %v41_v15 }
  0x2c   :  { %v45_v18 = vmul.f32 %v43_v16, %v28_v0  ;;  %v46_v19 = vmul.f32 %v44_v17, %v28_v0 }
  0x2e   :  { %47 = vst [vmem:[#allocation6] sm:$0xff] %v45_v18  ;;  %48 = vst [vmem:[#allocation6 + $0x8] sm:$0xff] %v46_v19 }
  0x2f   :  { %101 = shalt.err (!%p98_p12)
}
  0x30   :  { %s102_s26 = scalar_lea.hbm %s162_s2, 256 }
  0x31   :  { %p103_p13 = scmp.ne.s32.totalorder %s162_s2, %s102_s26  ;;  %p106_p0 = scmp.lt.u32.totalorder %s102_s26, %s162_s2 }
  0x33   :  { %p108_p1 = pnand %p106_p0, %p103_p13 }
  0x35   :  { %111 = shalt.err (!%p108_p1)
}
  0x36   :  { %58 = dma.vmem_to_hbm [thread:$0]  %s56_s23, 256, %s162_s2, [#allocation5]  }
  0x37   :  { %114 = dma.done.wait [#allocation5], 256  }
  0x38   :  { %115 = vsyncadd [#allocation5], 4294967040 }
  0x39   :  { %62 = vsyncpa [#allocation4], 1 }
  0x3a   :  { %63 = vsyncpa [#allocation5], 1 }

</bundles_post_ra>
